<compile_context>
chip_gen: v7x
topology: tpu7x:2x2x1
jax: 0.10.0
libtpu: 0.0.40
codegen_flags: <defaults>
</compile_context>

<pallas_src>
import jax
import jax.numpy as jnp
from jax.experimental import pallas as pl
from jax.experimental.pallas import tpu as pltpu  # noqa: F401  (TPU backend)


def _lstm_layer_kernel(x_ref, h0_ref, c0_ref, wih_ref, whh_ref, b_ref,
                       out_ref, hn_ref):
    # x_ref:  (T, Bp, I)  time-major input sequence
    # h0/c0:  (Bp, H)
    # wih:    (I, 4H)   (pre-transposed W_ih^T)
    # whh:    (H, 4H)   (pre-transposed W_hh^T)
    # b:      (1, 4H)   (b_ih + b_hh)
    # out:    (T, Bp, H) full hidden sequence (feeds next layer / fc)
    # hn:     (Bp, H)   final hidden state
    T, Bp, I = x_ref.shape
    H = h0_ref.shape[-1]

    wih = wih_ref[...]
    whh = whh_ref[...]

    # ---- Hoisted input projection: one MXU matmul for all timesteps, with the
    # combined bias folded in (outside the serial recurrence). ----
    x_all = x_ref[...].reshape(T * Bp, I)                       # leading-dim merge, layout-free
    gx = jnp.dot(x_all, wih, preferred_element_type=jnp.float32) + b_ref[...]
    gx = gx.reshape(T, Bp, 4 * H)                               # (T, Bp, 4H)

    h = h0_ref[...].astype(jnp.float32)
    c = c0_ref[...].astype(jnp.float32)

    # ---- Fully-unrolled recurrence (T is static & small). Only the recurrent
    # matmul + gate nonlinearities remain on the serial critical path. ----
    for t in range(T):
        gates = gx[t] + jnp.dot(h, whh, preferred_element_type=jnp.float32)  # (Bp, 4H)
        i_g = jax.nn.sigmoid(gates[:, 0 * H:1 * H])
        f_g = jax.nn.sigmoid(gates[:, 1 * H:2 * H])
        g_g = jnp.tanh(gates[:, 2 * H:3 * H])
        o_g = jax.nn.sigmoid(gates[:, 3 * H:4 * H])
        c = f_g * c + i_g * g_g
        h = o_g * jnp.tanh(c)
        out_ref[t] = h.astype(out_ref.dtype)

    hn_ref[...] = h.astype(hn_ref.dtype)


def _full_spec(shape):
    return pl.BlockSpec(shape, lambda: (0,) * len(shape))


def lstm_forward_pallas(x, h0, c0, layer_params):
    """x: (B, T, I); h0, c0: (L, B, H).
    layer_params: list of (w_ih (4H, I_l), w_hh (4H, H), b_ih (4H,), b_hh (4H,)).
    Returns (h_n (L, B, H), out (B, T, H))."""
    B, T, _ = x.shape
    L, _, H = h0.shape

    # Pad batch (sublane) dim to a multiple of 8 so tiles are full-width.
    Bp = ((B + 7) // 8) * 8
    pad_b = Bp - B

    # Time-major staging of x (tiny; for large x fold this into a T-chunked grid).
    x_tm = jnp.transpose(x, (1, 0, 2))                           # (T, B, I)
    x_tm = jnp.pad(x_tm, ((0, 0), (0, pad_b), (0, 0)))
    h0p = jnp.pad(h0, ((0, 0), (0, pad_b), (0, 0)))
    c0p = jnp.pad(c0, ((0, 0), (0, pad_b), (0, 0)))

    layer_in = x_tm
    hns = []
    out_seq = None
    for l in range(L):
        w_ih, w_hh, b_ih, b_hh = layer_params[l]
        I_l = layer_in.shape[-1]
        wih_t = jnp.transpose(w_ih).astype(jnp.float32)          # (I_l, 4H)
        whh_t = jnp.transpose(w_hh).astype(jnp.float32)          # (H, 4H)
        bias = (b_ih + b_hh).reshape(1, 4 * H).astype(jnp.float32)

        out_seq, hn = pl.pallas_call(
            _lstm_layer_kernel,
            out_shape=(
                jax.ShapeDtypeStruct((T, Bp, H), x.dtype),
                jax.ShapeDtypeStruct((Bp, H), x.dtype),
            ),
            in_specs=[
                _full_spec((T, Bp, I_l)),
                _full_spec((Bp, H)),
                _full_spec((Bp, H)),
                _full_spec((I_l, 4 * H)),
                _full_spec((H, 4 * H)),
                _full_spec((1, 4 * H)),
            ],
            out_specs=(
                _full_spec((T, Bp, H)),
                _full_spec((Bp, H)),
            ),
        )(layer_in, h0p[l], c0p[l], wih_t, whh_t, bias)

        hns.append(hn[:B])
        layer_in = out_seq                                       # next layer consumes full sequence

    h_n = jnp.stack(hns, axis=0)                                 # (L, B, H)
    out_bt = jnp.transpose(out_seq[:, :B, :], (1, 0, 2))         # (B, T, H)
    return h_n, out_bt


def lstm_forward_ref(x, h0, c0, layer_params):
    """Pure-JAX reference (layer-by-layer, step-by-step)."""
    B, T, _ = x.shape
    L, _, H = h0.shape
    layer_in = x.astype(jnp.float32)
    hns = []
    for l in range(L):
        w_ih, w_hh, b_ih, b_hh = layer_params[l]
        h = h0[l].astype(jnp.float32)
        c = c0[l].astype(jnp.float32)
        outs = []
        for t in range(T):
            gates = layer_in[:, t, :] @ w_ih.T + b_ih + h @ w_hh.T + b_hh
            i_g = jax.nn.sigmoid(gates[:, 0 * H:1 * H])
            f_g = jax.nn.sigmoid(gates[:, 1 * H:2 * H])
            g_g = jnp.tanh(gates[:, 2 * H:3 * H])
            o_g = jax.nn.sigmoid(gates[:, 3 * H:4 * H])
            c = f_g * c + i_g * g_g
            h = o_g * jnp.tanh(c)
            outs.append(h)
        layer_in = jnp.stack(outs, axis=1)                       # (B, T, H)
        hns.append(h)
    return jnp.stack(hns, axis=0).astype(x.dtype), layer_in.astype(x.dtype)


if __name__ == "__main__":
    # Small shapes consistent with the module.
    B, T, I, H, O = 2, 8, 32, 32, 16
    num_layers = 2

    key = jax.random.PRNGKey(0)
    keys = jax.random.split(key, 4 + 4 * num_layers + 2)
    x = jax.random.normal(keys[0], (B, T, I), dtype=jnp.float32)
    h0 = jax.random.normal(keys[1], (num_layers, B, H), dtype=jnp.float32)
    c0 = jax.random.normal(keys[2], (num_layers, B, H), dtype=jnp.float32)

    scale = 1.0 / jnp.sqrt(jnp.float32(H))
    layer_params = []
    for l in range(num_layers):
        in_l = I if l == 0 else H
        kw = keys[4 + 4 * l: 4 + 4 * (l + 1)]
        w_ih = jax.random.uniform(kw[0], (4 * H, in_l), minval=-scale, maxval=scale)
        w_hh = jax.random.uniform(kw[1], (4 * H, H), minval=-scale, maxval=scale)
        b_ih = jax.random.uniform(kw[2], (4 * H,), minval=-scale, maxval=scale)
        b_hh = jax.random.uniform(kw[3], (4 * H,), minval=-scale, maxval=scale)
        layer_params.append((w_ih, w_hh, b_ih, b_hh))
    fc_w = jax.random.uniform(keys[-2], (O, H), minval=-scale, maxval=scale)
    fc_b = jax.random.uniform(keys[-1], (O,), minval=-scale, maxval=scale)

    h_n, out_bt = lstm_forward_pallas(x, h0, c0, layer_params)
    h_n = jax.block_until_ready(h_n)
    out_bt = jax.block_until_ready(out_bt)

    # fc is applied to the last timestep of the top-layer output, as in the
    # module, but its result is discarded (forward returns state[0] = h_n).
    _unused_fc = out_bt[:, -1, :] @ fc_w.T + fc_b

    # Correctness check against a pure-JAX reference.
    ref_hn, ref_out = lstm_forward_ref(x, h0, c0, layer_params)
    assert h_n.shape == (num_layers, B, H)
    assert jnp.allclose(h_n, ref_hn, atol=3e-5, rtol=1e-5)
    assert jnp.allclose(out_bt, ref_out, atol=3e-5, rtol=1e-5)

    print("KERNEL_OK")
</pallas_src>

<mosaic_0001>
module attributes {stable_mosaic.version = 11 : i64} {
  func.func @_lstm_layer_kernel(%arg0: memref<8x8x32xf32, #tpu.memory_space<vmem>>, %arg1: memref<8x32xf32, #tpu.memory_space<vmem>>, %arg2: memref<8x32xf32, #tpu.memory_space<vmem>>, %arg3: memref<32x128xf32, #tpu.memory_space<vmem>>, %arg4: memref<32x128xf32, #tpu.memory_space<vmem>>, %arg5: memref<1x128xf32, #tpu.memory_space<vmem>>, %arg6: memref<8x8x32xf32, #tpu.memory_space<vmem>>, %arg7: memref<8x32xf32, #tpu.memory_space<vmem>>) attributes {dimension_semantics = [], scalar_prefetch = 0 : i64, scratch_operands = 0 : i64, tpu.core_type = #tpu.core_type<tc>} {
    %c0 = arith.constant 0 : index
    %c0_0 = arith.constant 0 : index
    %0 = vector.load %arg3[%c0, %c0_0] : memref<32x128xf32, #tpu.memory_space<vmem>>, vector<32x128xf32>
    %c0_1 = arith.constant 0 : index
    %c0_2 = arith.constant 0 : index
    %1 = vector.load %arg4[%c0_1, %c0_2] : memref<32x128xf32, #tpu.memory_space<vmem>>, vector<32x128xf32>
    %c0_3 = arith.constant 0 : index
    %c0_4 = arith.constant 0 : index
    %c0_5 = arith.constant 0 : index
    %2 = vector.load %arg0[%c0_3, %c0_4, %c0_5] : memref<8x8x32xf32, #tpu.memory_space<vmem>>, vector<8x8x32xf32>
    %3 = vector.shape_cast %2 : vector<8x8x32xf32> to vector<64x32xf32>
    %cst = arith.constant dense<0.000000e+00> : vector<64x128xf32>
    %4 = tpu.matmul %3, %0, %cst {dimension_numbers = #tpu.dot_dimension_numbers<[1], [0], [0], [1], [0, 0, 1, 1], [], []>} : vector<64x32xf32>, vector<32x128xf32>, vector<64x128xf32> -> vector<64x128xf32>
    %c0_6 = arith.constant 0 : index
    %c0_7 = arith.constant 0 : index
    %5 = vector.load %arg5[%c0_6, %c0_7] : memref<1x128xf32, #tpu.memory_space<vmem>>, vector<1x128xf32>
    %6 = vector.broadcast %5 : vector<1x128xf32> to vector<64x128xf32>
    %7 = arith.addf %4, %6 : vector<64x128xf32>
    %8 = vector.shape_cast %7 : vector<64x128xf32> to vector<8x8x128xf32>
    %c0_8 = arith.constant 0 : index
    %c0_9 = arith.constant 0 : index
    %9 = vector.load %arg1[%c0_8, %c0_9] : memref<8x32xf32, #tpu.memory_space<vmem>>, vector<8x32xf32>
    %c0_10 = arith.constant 0 : index
    %c0_11 = arith.constant 0 : index
    %10 = vector.load %arg2[%c0_10, %c0_11] : memref<8x32xf32, #tpu.memory_space<vmem>>, vector<8x32xf32>
    %11 = vector.extract_strided_slice %8 {offsets = [0, 0, 0], sizes = [1, 8, 128], strides = [1, 1, 1]} : vector<8x8x128xf32> to vector<1x8x128xf32>
    %12 = vector.shape_cast %11 : vector<1x8x128xf32> to vector<8x128xf32>
    %cst_12 = arith.constant dense<0.000000e+00> : vector<8x128xf32>
    %13 = tpu.matmul %9, %1, %cst_12 {dimension_numbers = #tpu.dot_dimension_numbers<[1], [0], [0], [1], [0, 0, 1, 1], [], []>} : vector<8x32xf32>, vector<32x128xf32>, vector<8x128xf32> -> vector<8x128xf32>
    %14 = arith.addf %12, %13 : vector<8x128xf32>
    %15 = vector.extract_strided_slice %14 {offsets = [0, 0], sizes = [8, 32], strides = [1, 1]} : vector<8x128xf32> to vector<8x32xf32>
    %16 = arith.negf %15 : vector<8x32xf32>
    %17 = math.exp %16 : vector<8x32xf32>
    %cst_13 = arith.constant 1.000000e+00 : f32
    %18 = vector.broadcast %cst_13 : f32 to vector<8x32xf32>
    %19 = arith.addf %18, %17 : vector<8x32xf32>
    %20 = arith.divf %18, %19 : vector<8x32xf32>
    %21 = vector.extract_strided_slice %14 {offsets = [0, 32], sizes = [8, 32], strides = [1, 1]} : vector<8x128xf32> to vector<8x32xf32>
    %22 = arith.negf %21 : vector<8x32xf32>
    %23 = math.exp %22 : vector<8x32xf32>
    %cst_14 = arith.constant 1.000000e+00 : f32
    %24 = vector.broadcast %cst_14 : f32 to vector<8x32xf32>
    %25 = arith.addf %24, %23 : vector<8x32xf32>
    %26 = arith.divf %24, %25 : vector<8x32xf32>
    %27 = vector.extract_strided_slice %14 {offsets = [0, 64], sizes = [8, 32], strides = [1, 1]} : vector<8x128xf32> to vector<8x32xf32>
    %28 = math.tanh %27 : vector<8x32xf32>
    %29 = vector.extract_strided_slice %14 {offsets = [0, 96], sizes = [8, 32], strides = [1, 1]} : vector<8x128xf32> to vector<8x32xf32>
    %30 = arith.negf %29 : vector<8x32xf32>
    %31 = math.exp %30 : vector<8x32xf32>
    %cst_15 = arith.constant 1.000000e+00 : f32
    %32 = vector.broadcast %cst_15 : f32 to vector<8x32xf32>
    %33 = arith.addf %32, %31 : vector<8x32xf32>
    %34 = arith.divf %32, %33 : vector<8x32xf32>
    %35 = arith.mulf %26, %10 : vector<8x32xf32>
    %36 = arith.mulf %20, %28 : vector<8x32xf32>
    %37 = arith.addf %35, %36 : vector<8x32xf32>
    %38 = math.tanh %37 : vector<8x32xf32>
    %39 = arith.mulf %34, %38 : vector<8x32xf32>
    %c0_16 = arith.constant 0 : index
    %c0_17 = arith.constant 0 : index
    %c0_18 = arith.constant 0 : index
    %40 = vector.load %arg6[%c0_16, %c0_17, %c0_18] : memref<8x8x32xf32, #tpu.memory_space<vmem>>, vector<1x8x32xf32>
    %41 = vector.shape_cast %40 : vector<1x8x32xf32> to vector<8x32xf32>
    %42 = vector.shape_cast %39 : vector<8x32xf32> to vector<1x8x32xf32>
    tpu.vector_store %arg6[%c0_16, %c0_17, %c0_18], %42 {strides = array<i32>} : memref<8x8x32xf32, #tpu.memory_space<vmem>>, vector<1x8x32xf32>,
    %43 = vector.extract_strided_slice %8 {offsets = [1, 0, 0], sizes = [1, 8, 128], strides = [1, 1, 1]} : vector<8x8x128xf32> to vector<1x8x128xf32>
    %44 = vector.shape_cast %43 : vector<1x8x128xf32> to vector<8x128xf32>
    %cst_19 = arith.constant dense<0.000000e+00> : vector<8x128xf32>
    %45 = tpu.matmul %39, %1, %cst_19 {dimension_numbers = #tpu.dot_dimension_numbers<[1], [0], [0], [1], [0, 0, 1, 1], [], []>} : vector<8x32xf32>, vector<32x128xf32>, vector<8x128xf32> -> vector<8x128xf32>
    %46 = arith.addf %44, %45 : vector<8x128xf32>
    %47 = vector.extract_strided_slice %46 {offsets = [0, 0], sizes = [8, 32], strides = [1, 1]} : vector<8x128xf32> to vector<8x32xf32>
    %48 = arith.negf %47 : vector<8x32xf32>
    %49 = math.exp %48 : vector<8x32xf32>
    %cst_20 = arith.constant 1.000000e+00 : f32
    %50 = vector.broadcast %cst_20 : f32 to vector<8x32xf32>
    %51 = arith.addf %50, %49 : vector<8x32xf32>
    %52 = arith.divf %50, %51 : vector<8x32xf32>
    %53 = vector.extract_strided_slice %46 {offsets = [0, 32], sizes = [8, 32], strides = [1, 1]} : vector<8x128xf32> to vector<8x32xf32>
    %54 = arith.negf %53 : vector<8x32xf32>
    %55 = math.exp %54 : vector<8x32xf32>
    %cst_21 = arith.constant 1.000000e+00 : f32
    %56 = vector.broadcast %cst_21 : f32 to vector<8x32xf32>
    %57 = arith.addf %56, %55 : vector<8x32xf32>
    %58 = arith.divf %56, %57 : vector<8x32xf32>
    %59 = vector.extract_strided_slice %46 {offsets = [0, 64], sizes = [8, 32], strides = [1, 1]} : vector<8x128xf32> to vector<8x32xf32>
    %60 = math.tanh %59 : vector<8x32xf32>
    %61 = vector.extract_strided_slice %46 {offsets = [0, 96], sizes = [8, 32], strides = [1, 1]} : vector<8x128xf32> to vector<8x32xf32>
    %62 = arith.negf %61 : vector<8x32xf32>
    %63 = math.exp %62 : vector<8x32xf32>
    %cst_22 = arith.constant 1.000000e+00 : f32
    %64 = vector.broadcast %cst_22 : f32 to vector<8x32xf32>
    %65 = arith.addf %64, %63 : vector<8x32xf32>
    %66 = arith.divf %64, %65 : vector<8x32xf32>
    %67 = arith.mulf %58, %37 : vector<8x32xf32>
    %68 = arith.mulf %52, %60 : vector<8x32xf32>
    %69 = arith.addf %67, %68 : vector<8x32xf32>
    %70 = math.tanh %69 : vector<8x32xf32>
    %71 = arith.mulf %66, %70 : vector<8x32xf32>
    %c1 = arith.constant 1 : index
    %c0_23 = arith.constant 0 : index
    %c0_24 = arith.constant 0 : index
    %72 = vector.load %arg6[%c1, %c0_23, %c0_24] : memref<8x8x32xf32, #tpu.memory_space<vmem>>, vector<1x8x32xf32>
    %73 = vector.shape_cast %72 : vector<1x8x32xf32> to vector<8x32xf32>
    %74 = vector.shape_cast %71 : vector<8x32xf32> to vector<1x8x32xf32>
    tpu.vector_store %arg6[%c1, %c0_23, %c0_24], %74 {strides = array<i32>} : memref<8x8x32xf32, #tpu.memory_space<vmem>>, vector<1x8x32xf32>,
    %75 = vector.extract_strided_slice %8 {offsets = [2, 0, 0], sizes = [1, 8, 128], strides = [1, 1, 1]} : vector<8x8x128xf32> to vector<1x8x128xf32>
    %76 = vector.shape_cast %75 : vector<1x8x128xf32> to vector<8x128xf32>
    %cst_25 = arith.constant dense<0.000000e+00> : vector<8x128xf32>
    %77 = tpu.matmul %71, %1, %cst_25 {dimension_numbers = #tpu.dot_dimension_numbers<[1], [0], [0], [1], [0, 0, 1, 1], [], []>} : vector<8x32xf32>, vector<32x128xf32>, vector<8x128xf32> -> vector<8x128xf32>
    %78 = arith.addf %76, %77 : vector<8x128xf32>
    %79 = vector.extract_strided_slice %78 {offsets = [0, 0], sizes = [8, 32], strides = [1, 1]} : vector<8x128xf32> to vector<8x32xf32>
    %80 = arith.negf %79 : vector<8x32xf32>
    %81 = math.exp %80 : vector<8x32xf32>
    %cst_26 = arith.constant 1.000000e+00 : f32
    %82 = vector.broadcast %cst_26 : f32 to vector<8x32xf32>
    %83 = arith.addf %82, %81 : vector<8x32xf32>
    %84 = arith.divf %82, %83 : vector<8x32xf32>
    %85 = vector.extract_strided_slice %78 {offsets = [0, 32], sizes = [8, 32], strides = [1, 1]} : vector<8x128xf32> to vector<8x32xf32>
    %86 = arith.negf %85 : vector<8x32xf32>
    %87 = math.exp %86 : vector<8x32xf32>
    %cst_27 = arith.constant 1.000000e+00 : f32
    %88 = vector.broadcast %cst_27 : f32 to vector<8x32xf32>
    %89 = arith.addf %88, %87 : vector<8x32xf32>
    %90 = arith.divf %88, %89 : vector<8x32xf32>
    %91 = vector.extract_strided_slice %78 {offsets = [0, 64], sizes = [8, 32], strides = [1, 1]} : vector<8x128xf32> to vector<8x32xf32>
    %92 = math.tanh %91 : vector<8x32xf32>
    %93 = vector.extract_strided_slice %78 {offsets = [0, 96], sizes = [8, 32], strides = [1, 1]} : vector<8x128xf32> to vector<8x32xf32>
    %94 = arith.negf %93 : vector<8x32xf32>
    %95 = math.exp %94 : vector<8x32xf32>
    %cst_28 = arith.constant 1.000000e+00 : f32
    %96 = vector.broadcast %cst_28 : f32 to vector<8x32xf32>
    %97 = arith.addf %96, %95 : vector<8x32xf32>
    %98 = arith.divf %96, %97 : vector<8x32xf32>
    %99 = arith.mulf %90, %69 : vector<8x32xf32>
    %100 = arith.mulf %84, %92 : vector<8x32xf32>
    %101 = arith.addf %99, %100 : vector<8x32xf32>
    %102 = math.tanh %101 : vector<8x32xf32>
    %103 = arith.mulf %98, %102 : vector<8x32xf32>
    %c2 = arith.constant 2 : index
    %c0_29 = arith.constant 0 : index
    %c0_30 = arith.constant 0 : index
    %104 = vector.load %arg6[%c2, %c0_29, %c0_30] : memref<8x8x32xf32, #tpu.memory_space<vmem>>, vector<1x8x32xf32>
    %105 = vector.shape_cast %104 : vector<1x8x32xf32> to vector<8x32xf32>
    %106 = vector.shape_cast %103 : vector<8x32xf32> to vector<1x8x32xf32>
    tpu.vector_store %arg6[%c2, %c0_29, %c0_30], %106 {strides = array<i32>} : memref<8x8x32xf32, #tpu.memory_space<vmem>>, vector<1x8x32xf32>,
    %107 = vector.extract_strided_slice %8 {offsets = [3, 0, 0], sizes = [1, 8, 128], strides = [1, 1, 1]} : vector<8x8x128xf32> to vector<1x8x128xf32>
    %108 = vector.shape_cast %107 : vector<1x8x128xf32> to vector<8x128xf32>
    %cst_31 = arith.constant dense<0.000000e+00> : vector<8x128xf32>
    %109 = tpu.matmul %103, %1, %cst_31 {dimension_numbers = #tpu.dot_dimension_numbers<[1], [0], [0], [1], [0, 0, 1, 1], [], []>} : vector<8x32xf32>, vector<32x128xf32>, vector<8x128xf32> -> vector<8x128xf32>
    %110 = arith.addf %108, %109 : vector<8x128xf32>
    %111 = vector.extract_strided_slice %110 {offsets = [0, 0], sizes = [8, 32], strides = [1, 1]} : vector<8x128xf32> to vector<8x32xf32>
    %112 = arith.negf %111 : vector<8x32xf32>
    %113 = math.exp %112 : vector<8x32xf32>
    %cst_32 = arith.constant 1.000000e+00 : f32
    %114 = vector.broadcast %cst_32 : f32 to vector<8x32xf32>
    %115 = arith.addf %114, %113 : vector<8x32xf32>
    %116 = arith.divf %114, %115 : vector<8x32xf32>
    %117 = vector.extract_strided_slice %110 {offsets = [0, 32], sizes = [8, 32], strides = [1, 1]} : vector<8x128xf32> to vector<8x32xf32>
    %118 = arith.negf %117 : vector<8x32xf32>
    %119 = math.exp %118 : vector<8x32xf32>
    %cst_33 = arith.constant 1.000000e+00 : f32
    %120 = vector.broadcast %cst_33 : f32 to vector<8x32xf32>
    %121 = arith.addf %120, %119 : vector<8x32xf32>
    %122 = arith.divf %120, %121 : vector<8x32xf32>
    %123 = vector.extract_strided_slice %110 {offsets = [0, 64], sizes = [8, 32], strides = [1, 1]} : vector<8x128xf32> to vector<8x32xf32>
    %124 = math.tanh %123 : vector<8x32xf32>
    %125 = vector.extract_strided_slice %110 {offsets = [0, 96], sizes = [8, 32], strides = [1, 1]} : vector<8x128xf32> to vector<8x32xf32>
    %126 = arith.negf %125 : vector<8x32xf32>
    %127 = math.exp %126 : vector<8x32xf32>
    %cst_34 = arith.constant 1.000000e+00 : f32
    %128 = vector.broadcast %cst_34 : f32 to vector<8x32xf32>
    %129 = arith.addf %128, %127 : vector<8x32xf32>
    %130 = arith.divf %128, %129 : vector<8x32xf32>
    %131 = arith.mulf %122, %101 : vector<8x32xf32>
    %132 = arith.mulf %116, %124 : vector<8x32xf32>
    %133 = arith.addf %131, %132 : vector<8x32xf32>
    %134 = math.tanh %133 : vector<8x32xf32>
    %135 = arith.mulf %130, %134 : vector<8x32xf32>
    %c3 = arith.constant 3 : index
    %c0_35 = arith.constant 0 : index
    %c0_36 = arith.constant 0 : index
    %136 = vector.load %arg6[%c3, %c0_35, %c0_36] : memref<8x8x32xf32, #tpu.memory_space<vmem>>, vector<1x8x32xf32>
    %137 = vector.shape_cast %136 : vector<1x8x32xf32> to vector<8x32xf32>
    %138 = vector.shape_cast %135 : vector<8x32xf32> to vector<1x8x32xf32>
    tpu.vector_store %arg6[%c3, %c0_35, %c0_36], %138 {strides = array<i32>} : memref<8x8x32xf32, #tpu.memory_space<vmem>>, vector<1x8x32xf32>,
    %139 = vector.extract_strided_slice %8 {offsets = [4, 0, 0], sizes = [1, 8, 128], strides = [1, 1, 1]} : vector<8x8x128xf32> to vector<1x8x128xf32>
    %140 = vector.shape_cast %139 : vector<1x8x128xf32> to vector<8x128xf32>
    %cst_37 = arith.constant dense<0.000000e+00> : vector<8x128xf32>
    %141 = tpu.matmul %135, %1, %cst_37 {dimension_numbers = #tpu.dot_dimension_numbers<[1], [0], [0], [1], [0, 0, 1, 1], [], []>} : vector<8x32xf32>, vector<32x128xf32>, vector<8x128xf32> -> vector<8x128xf32>
    %142 = arith.addf %140, %141 : vector<8x128xf32>
    %143 = vector.extract_strided_slice %142 {offsets = [0, 0], sizes = [8, 32], strides = [1, 1]} : vector<8x128xf32> to vector<8x32xf32>
    %144 = arith.negf %143 : vector<8x32xf32>
    %145 = math.exp %144 : vector<8x32xf32>
    %cst_38 = arith.constant 1.000000e+00 : f32
    %146 = vector.broadcast %cst_38 : f32 to vector<8x32xf32>
    %147 = arith.addf %146, %145 : vector<8x32xf32>
    %148 = arith.divf %146, %147 : vector<8x32xf32>
    %149 = vector.extract_strided_slice %142 {offsets = [0, 32], sizes = [8, 32], strides = [1, 1]} : vector<8x128xf32> to vector<8x32xf32>
    %150 = arith.negf %149 : vector<8x32xf32>
    %151 = math.exp %150 : vector<8x32xf32>
    %cst_39 = arith.constant 1.000000e+00 : f32
    %152 = vector.broadcast %cst_39 : f32 to vector<8x32xf32>
    %153 = arith.addf %152, %151 : vector<8x32xf32>
    %154 = arith.divf %152, %153 : vector<8x32xf32>
    %155 = vector.extract_strided_slice %142 {offsets = [0, 64], sizes = [8, 32], strides = [1, 1]} : vector<8x128xf32> to vector<8x32xf32>
    %156 = math.tanh %155 : vector<8x32xf32>
    %157 = vector.extract_strided_slice %142 {offsets = [0, 96], sizes = [8, 32], strides = [1, 1]} : vector<8x128xf32> to vector<8x32xf32>
    %158 = arith.negf %157 : vector<8x32xf32>
    %159 = math.exp %158 : vector<8x32xf32>
    %cst_40 = arith.constant 1.000000e+00 : f32
    %160 = vector.broadcast %cst_40 : f32 to vector<8x32xf32>
    %161 = arith.addf %160, %159 : vector<8x32xf32>
    %162 = arith.divf %160, %161 : vector<8x32xf32>
    %163 = arith.mulf %154, %133 : vector<8x32xf32>
    %164 = arith.mulf %148, %156 : vector<8x32xf32>
    %165 = arith.addf %163, %164 : vector<8x32xf32>
    %166 = math.tanh %165 : vector<8x32xf32>
    %167 = arith.mulf %162, %166 : vector<8x32xf32>
    %c4 = arith.constant 4 : index
    %c0_41 = arith.constant 0 : index
    %c0_42 = arith.constant 0 : index
    %168 = vector.load %arg6[%c4, %c0_41, %c0_42] : memref<8x8x32xf32, #tpu.memory_space<vmem>>, vector<1x8x32xf32>
    %169 = vector.shape_cast %168 : vector<1x8x32xf32> to vector<8x32xf32>
    %170 = vector.shape_cast %167 : vector<8x32xf32> to vector<1x8x32xf32>
    tpu.vector_store %arg6[%c4, %c0_41, %c0_42], %170 {strides = array<i32>} : memref<8x8x32xf32, #tpu.memory_space<vmem>>, vector<1x8x32xf32>,
    %171 = vector.extract_strided_slice %8 {offsets = [5, 0, 0], sizes = [1, 8, 128], strides = [1, 1, 1]} : vector<8x8x128xf32> to vector<1x8x128xf32>
    %172 = vector.shape_cast %171 : vector<1x8x128xf32> to vector<8x128xf32>
    %cst_43 = arith.constant dense<0.000000e+00> : vector<8x128xf32>
    %173 = tpu.matmul %167, %1, %cst_43 {dimension_numbers = #tpu.dot_dimension_numbers<[1], [0], [0], [1], [0, 0, 1, 1], [], []>} : vector<8x32xf32>, vector<32x128xf32>, vector<8x128xf32> -> vector<8x128xf32>
    %174 = arith.addf %172, %173 : vector<8x128xf32>
    %175 = vector.extract_strided_slice %174 {offsets = [0, 0], sizes = [8, 32], strides = [1, 1]} : vector<8x128xf32> to vector<8x32xf32>
    %176 = arith.negf %175 : vector<8x32xf32>
    %177 = math.exp %176 : vector<8x32xf32>
    %cst_44 = arith.constant 1.000000e+00 : f32
    %178 = vector.broadcast %cst_44 : f32 to vector<8x32xf32>
    %179 = arith.addf %178, %177 : vector<8x32xf32>
    %180 = arith.divf %178, %179 : vector<8x32xf32>
    %181 = vector.extract_strided_slice %174 {offsets = [0, 32], sizes = [8, 32], strides = [1, 1]} : vector<8x128xf32> to vector<8x32xf32>
    %182 = arith.negf %181 : vector<8x32xf32>
    %183 = math.exp %182 : vector<8x32xf32>
    %cst_45 = arith.constant 1.000000e+00 : f32
    %184 = vector.broadcast %cst_45 : f32 to vector<8x32xf32>
    %185 = arith.addf %184, %183 : vector<8x32xf32>
    %186 = arith.divf %184, %185 : vector<8x32xf32>
    %187 = vector.extract_strided_slice %174 {offsets = [0, 64], sizes = [8, 32], strides = [1, 1]} : vector<8x128xf32> to vector<8x32xf32>
    %188 = math.tanh %187 : vector<8x32xf32>
    %189 = vector.extract_strided_slice %174 {offsets = [0, 96], sizes = [8, 32], strides = [1, 1]} : vector<8x128xf32> to vector<8x32xf32>
    %190 = arith.negf %189 : vector<8x32xf32>
    %191 = math.exp %190 : vector<8x32xf32>
    %cst_46 = arith.constant 1.000000e+00 : f32
    %192 = vector.broadcast %cst_46 : f32 to vector<8x32xf32>
    %193 = arith.addf %192, %191 : vector<8x32xf32>
    %194 = arith.divf %192, %193 : vector<8x32xf32>
    %195 = arith.mulf %186, %165 : vector<8x32xf32>
    %196 = arith.mulf %180, %188 : vector<8x32xf32>
    %197 = arith.addf %195, %196 : vector<8x32xf32>
    %198 = math.tanh %197 : vector<8x32xf32>
    %199 = arith.mulf %194, %198 : vector<8x32xf32>
    %c5 = arith.constant 5 : index
    %c0_47 = arith.constant 0 : index
    %c0_48 = arith.constant 0 : index
    %200 = vector.load %arg6[%c5, %c0_47, %c0_48] : memref<8x8x32xf32, #tpu.memory_space<vmem>>, vector<1x8x32xf32>
    %201 = vector.shape_cast %200 : vector<1x8x32xf32> to vector<8x32xf32>
    %202 = vector.shape_cast %199 : vector<8x32xf32> to vector<1x8x32xf32>
    tpu.vector_store %arg6[%c5, %c0_47, %c0_48], %202 {strides = array<i32>} : memref<8x8x32xf32, #tpu.memory_space<vmem>>, vector<1x8x32xf32>,
    %203 = vector.extract_strided_slice %8 {offsets = [6, 0, 0], sizes = [1, 8, 128], strides = [1, 1, 1]} : vector<8x8x128xf32> to vector<1x8x128xf32>
    %204 = vector.shape_cast %203 : vector<1x8x128xf32> to vector<8x128xf32>
    %cst_49 = arith.constant dense<0.000000e+00> : vector<8x128xf32>
    %205 = tpu.matmul %199, %1, %cst_49 {dimension_numbers = #tpu.dot_dimension_numbers<[1], [0], [0], [1], [0, 0, 1, 1], [], []>} : vector<8x32xf32>, vector<32x128xf32>, vector<8x128xf32> -> vector<8x128xf32>
    %206 = arith.addf %204, %205 : vector<8x128xf32>
    %207 = vector.extract_strided_slice %206 {offsets = [0, 0], sizes = [8, 32], strides = [1, 1]} : vector<8x128xf32> to vector<8x32xf32>
    %208 = arith.negf %207 : vector<8x32xf32>
    %209 = math.exp %208 : vector<8x32xf32>
    %cst_50 = arith.constant 1.000000e+00 : f32
    %210 = vector.broadcast %cst_50 : f32 to vector<8x32xf32>
    %211 = arith.addf %210, %209 : vector<8x32xf32>
    %212 = arith.divf %210, %211 : vector<8x32xf32>
    %213 = vector.extract_strided_slice %206 {offsets = [0, 32], sizes = [8, 32], strides = [1, 1]} : vector<8x128xf32> to vector<8x32xf32>
    %214 = arith.negf %213 : vector<8x32xf32>
    %215 = math.exp %214 : vector<8x32xf32>
    %cst_51 = arith.constant 1.000000e+00 : f32
    %216 = vector.broadcast %cst_51 : f32 to vector<8x32xf32>
    %217 = arith.addf %216, %215 : vector<8x32xf32>
    %218 = arith.divf %216, %217 : vector<8x32xf32>
    %219 = vector.extract_strided_slice %206 {offsets = [0, 64], sizes = [8, 32], strides = [1, 1]} : vector<8x128xf32> to vector<8x32xf32>
    %220 = math.tanh %219 : vector<8x32xf32>
    %221 = vector.extract_strided_slice %206 {offsets = [0, 96], sizes = [8, 32], strides = [1, 1]} : vector<8x128xf32> to vector<8x32xf32>
    %222 = arith.negf %221 : vector<8x32xf32>
    %223 = math.exp %222 : vector<8x32xf32>
    %cst_52 = arith.constant 1.000000e+00 : f32
    %224 = vector.broadcast %cst_52 : f32 to vector<8x32xf32>
    %225 = arith.addf %224, %223 : vector<8x32xf32>
    %226 = arith.divf %224, %225 : vector<8x32xf32>
    %227 = arith.mulf %218, %197 : vector<8x32xf32>
    %228 = arith.mulf %212, %220 : vector<8x32xf32>
    %229 = arith.addf %227, %228 : vector<8x32xf32>
    %230 = math.tanh %229 : vector<8x32xf32>
    %231 = arith.mulf %226, %230 : vector<8x32xf32>
    %c6 = arith.constant 6 : index
    %c0_53 = arith.constant 0 : index
    %c0_54 = arith.constant 0 : index
    %232 = vector.load %arg6[%c6, %c0_53, %c0_54] : memref<8x8x32xf32, #tpu.memory_space<vmem>>, vector<1x8x32xf32>
    %233 = vector.shape_cast %232 : vector<1x8x32xf32> to vector<8x32xf32>
    %234 = vector.shape_cast %231 : vector<8x32xf32> to vector<1x8x32xf32>
    tpu.vector_store %arg6[%c6, %c0_53, %c0_54], %234 {strides = array<i32>} : memref<8x8x32xf32, #tpu.memory_space<vmem>>, vector<1x8x32xf32>,
    %235 = vector.extract_strided_slice %8 {offsets = [7, 0, 0], sizes = [1, 8, 128], strides = [1, 1, 1]} : vector<8x8x128xf32> to vector<1x8x128xf32>
    %236 = vector.shape_cast %235 : vector<1x8x128xf32> to vector<8x128xf32>
    %cst_55 = arith.constant dense<0.000000e+00> : vector<8x128xf32>
    %237 = tpu.matmul %231, %1, %cst_55 {dimension_numbers = #tpu.dot_dimension_numbers<[1], [0], [0], [1], [0, 0, 1, 1], [], []>} : vector<8x32xf32>, vector<32x128xf32>, vector<8x128xf32> -> vector<8x128xf32>
    %238 = arith.addf %236, %237 : vector<8x128xf32>
    %239 = vector.extract_strided_slice %238 {offsets = [0, 0], sizes = [8, 32], strides = [1, 1]} : vector<8x128xf32> to vector<8x32xf32>
    %240 = arith.negf %239 : vector<8x32xf32>
    %241 = math.exp %240 : vector<8x32xf32>
    %cst_56 = arith.constant 1.000000e+00 : f32
    %242 = vector.broadcast %cst_56 : f32 to vector<8x32xf32>
    %243 = arith.addf %242, %241 : vector<8x32xf32>
    %244 = arith.divf %242, %243 : vector<8x32xf32>
    %245 = vector.extract_strided_slice %238 {offsets = [0, 32], sizes = [8, 32], strides = [1, 1]} : vector<8x128xf32> to vector<8x32xf32>
    %246 = arith.negf %245 : vector<8x32xf32>
    %247 = math.exp %246 : vector<8x32xf32>
    %cst_57 = arith.constant 1.000000e+00 : f32
    %248 = vector.broadcast %cst_57 : f32 to vector<8x32xf32>
    %249 = arith.addf %248, %247 : vector<8x32xf32>
    %250 = arith.divf %248, %249 : vector<8x32xf32>
    %251 = vector.extract_strided_slice %238 {offsets = [0, 64], sizes = [8, 32], strides = [1, 1]} : vector<8x128xf32> to vector<8x32xf32>
    %252 = math.tanh %251 : vector<8x32xf32>
    %253 = vector.extract_strided_slice %238 {offsets = [0, 96], sizes = [8, 32], strides = [1, 1]} : vector<8x128xf32> to vector<8x32xf32>
    %254 = arith.negf %253 : vector<8x32xf32>
    %255 = math.exp %254 : vector<8x32xf32>
    %cst_58 = arith.constant 1.000000e+00 : f32
    %256 = vector.broadcast %cst_58 : f32 to vector<8x32xf32>
    %257 = arith.addf %256, %255 : vector<8x32xf32>
    %258 = arith.divf %256, %257 : vector<8x32xf32>
    %259 = arith.mulf %250, %229 : vector<8x32xf32>
    %260 = arith.mulf %244, %252 : vector<8x32xf32>
    %261 = arith.addf %259, %260 : vector<8x32xf32>
    %262 = math.tanh %261 : vector<8x32xf32>
    %263 = arith.mulf %258, %262 : vector<8x32xf32>
    %c7 = arith.constant 7 : index
    %c0_59 = arith.constant 0 : index
    %c0_60 = arith.constant 0 : index
    %264 = vector.load %arg6[%c7, %c0_59, %c0_60] : memref<8x8x32xf32, #tpu.memory_space<vmem>>, vector<1x8x32xf32>
    %265 = vector.shape_cast %264 : vector<1x8x32xf32> to vector<8x32xf32>
    %266 = vector.shape_cast %263 : vector<8x32xf32> to vector<1x8x32xf32>
    tpu.vector_store %arg6[%c7, %c0_59, %c0_60], %266 {strides = array<i32>} : memref<8x8x32xf32, #tpu.memory_space<vmem>>, vector<1x8x32xf32>,
    %c0_61 = arith.constant 0 : index
    %c0_62 = arith.constant 0 : index
    %267 = vector.load %arg7[%c0_61, %c0_62] : memref<8x32xf32, #tpu.memory_space<vmem>>, vector<8x32xf32>
    tpu.vector_store %arg7[%c0_61, %c0_62], %263 {strides = array<i32>} : memref<8x32xf32, #tpu.memory_space<vmem>>, vector<8x32xf32>,
    return
  }
}

</mosaic_0001>

<bundles_post_ra>
// kernel: tpu_custom_call.1
= control target key start
LH: loop header
LB: loop body
LE: loop exit
PB: predicated region body
PF: predicated region fallthrough
CT: control target
= control target key end

     0   :  { %13 = vsyncpa [#allocation3], 0  ;;  %s1876_s0 = inlined_call_operand.hbm [shape: f32[8,8,32], index: 0, kind: input, shape index: {}]   ;;  %s1877_s1 = inlined_call_operand.hbm [shape: f32[8,32], index: 1, kind: input, shape index: {}]   ;;  %s1878_s2 = inlined_call_operand.hbm [shape: f32[8,32], index: 2, kind: input, shape index: {}]   ;;  %s1879_s3 = inlined_call_operand.hbm [shape: f32[32,128], index: 3, kind: input, shape index: {}]   ;;  %s1880_s4 = inlined_call_operand.hbm [shape: f32[32,128], index: 4, kind: input, shape index: {}]   ;;  %s1881_s5 = inlined_call_operand.vmem [shape: f32[1,128], index: 5, kind: input, shape index: {}]   ;;  %s1882_s6 = inlined_call_operand.hbm [shape: f32[8,8,32], index: 6, kind: output, shape index: {0}]   ;;  %s1883_s7 = inlined_call_operand.hbm [shape: f32[8,32], index: 7, kind: output, shape index: {1}]  }
   0x1   :  { %14 = vsyncpa [#allocation6], 0 }
   0x2   :  { %15 = vsyncpa [#allocation9], 0 }
   0x3   :  { %16 = vsyncpa [#allocation4], 0 }
   0x4   :  { %17 = vsyncpa [#allocation13], 0  ;;  %s1591_s24 = smov [#allocation5]   ;;  %s1427_s28 = scalar_lea.hbm %s1877_s1, 128 }
   0x5   :  { %s36_s25 = sshll.u32 %s1591_s24, 4  ;;  %p1428_p0 = scmp.ne.s32.totalorder %s1877_s1, %s1427_s28  ;;  %s37_s25 = int_to_ptr.vmem [resolvable:$true] %s36_s25 }
   0x6   :  { %p1431_p1 = scmp.lt.u32.totalorder %s1427_s28, %s1877_s1 }
   0x8   :  { %p1433_p2 = pnand %p1431_p1, %p1428_p0 }
   0xa   :  { %1436 = shalt.err (!%p1433_p2)
}
   0xb   :  { %s1437_s10 = scalar_lea.vmem %s37_s25, 128  ;;  %p1442_p4 = scmp.lt.s32.totalorder %s37_s25, %s37_s25 }
   0xc   :  { %p1438_p3 = scmp.ne.s32.totalorder %s37_s25, %s1437_s10  ;;  %p1443_p5 = scmp.lt.s32.totalorder %s1437_s10, %s1437_s10 }
   0xe   :  { %p1444_p6 = por %p1443_p5, %p1442_p4 }
  0x10   :  { %p1445_p7 = pnand %p1444_p6, %p1438_p3 }
  0x12   :  { %1448 = shalt.err (!%p1445_p7)
}
  0x13   :  { %39 = dma.hbm_to_vmem [thread:$0]  %s1877_s1, 128, %s37_s25, [#allocation6]  }
  0x14   :  { %s1592_s13 = smov [#allocation8]   ;;  %s1593_s15 = smov [#allocation2]  }
  0x15   :  { %s55_s14 = sshll.u32 %s1592_s13, 4  ;;  %s23_s16 = sshll.u32 %s1593_s15, 4  ;;  %s56_s14 = int_to_ptr.vmem [resolvable:$true] %s55_s14  ;;  %s24_s16 = int_to_ptr.vmem [resolvable:$true] %s23_s16 }
  0x16   :  { %s1449_s19 = scalar_lea.hbm %s1879_s3, 512 }
  0x17   :  { %p1450_p8 = scmp.ne.s32.totalorder %s1879_s3, %s1449_s19  ;;  %p1453_p9 = scmp.lt.u32.totalorder %s1449_s19, %s1879_s3 }
  0x19   :  { %p1455_p10 = pnand %p1453_p9, %p1450_p8 }
  0x1b   :  { %1458 = shalt.err (!%p1455_p10)
}
  0x1c   :  { %s1459_s1 = scalar_lea.vmem %s56_s14, 512  ;;  %p1464_p12 = scmp.lt.s32.totalorder %s56_s14, %s56_s14 }
  0x1d   :  { %p1460_p11 = scmp.ne.s32.totalorder %s56_s14, %s1459_s1  ;;  %p1465_p13 = scmp.lt.s32.totalorder %s1459_s1, %s1459_s1 }
  0x1f   :  { %p1466_p0 = por %p1465_p13, %p1464_p12 }
  0x21   :  { %p1467_p1 = pnand %p1466_p0, %p1460_p11 }
  0x23   :  { %1470 = shalt.err (!%p1467_p1)
}
  0x24   :  { %s1594_s24 = smov 128   ;;  %s1595_s25 = smov 8  }
  0x25   :  { %61 = dma.hbm_to_vmem [thread:$0]  %s1879_s3, 512, %s56_s14, [#allocation9], %s1594_s24, %s1594_s24, %s1595_s25  }
  0x26   :  { %s1471_s30 = scalar_lea.hbm %s1876_s0, 1024 }
  0x27   :  { %p1472_p2 = scmp.ne.s32.totalorder %s1876_s0, %s1471_s30  ;;  %p1475_p3 = scmp.lt.u32.totalorder %s1471_s30, %s1876_s0 }
  0x29   :  { %p1477_p4 = pnand %p1475_p3, %p1472_p2 }
  0x2b   :  { %1480 = shalt.err (!%p1477_p4)
}
  0x2c   :  { %s1481_s12 = scalar_lea.vmem %s24_s16, 1024  ;;  %p1486_p6 = scmp.lt.s32.totalorder %s24_s16, %s24_s16 }
  0x2d   :  { %p1482_p5 = scmp.ne.s32.totalorder %s24_s16, %s1481_s12  ;;  %p1487_p7 = scmp.lt.s32.totalorder %s1481_s12, %s1481_s12 }
  0x2f   :  { %p1488_p8 = por %p1487_p7, %p1486_p6 }
  0x31   :  { %p1489_p9 = pnand %p1488_p8, %p1482_p5 }
  0x33   :  { %1492 = shalt.err (!%p1489_p9)
}
  0x34   :  { %29 = dma.hbm_to_vmem [thread:$0]  %s1876_s0, 1024, %s24_s16, [#allocation3], %s1594_s24, %s1594_s24, %s1595_s25  }
  0x35   :  { %s1596_s14 = smov [#allocation7]   ;;  %s1597_s17 = smov [#allocation10]  }
  0x36   :  { %s46_s15 = sshll.u32 %s1596_s14, 4  ;;  %s67_s18 = sshll.u32 %s1597_s17, 4  ;;  %s47_s15 = int_to_ptr.vmem [resolvable:$true] %s46_s15  ;;  %s68_s18 = int_to_ptr.vmem [resolvable:$true] %s67_s18 }
  0x37   :  { %s1493_s21 = scalar_lea.hbm %s1878_s2, 128 }
  0x38   :  { %p1494_p10 = scmp.ne.s32.totalorder %s1878_s2, %s1493_s21  ;;  %p1497_p11 = scmp.lt.u32.totalorder %s1493_s21, %s1878_s2 }
  0x3a   :  { %p1499_p12 = pnand %p1497_p11, %p1494_p10 }
  0x3c   :  { %1502 = shalt.err (!%p1499_p12)
}
  0x3d   :  { %s1503_s0 = scalar_lea.vmem %s47_s15, 128  ;;  %p1508_p0 = scmp.lt.s32.totalorder %s47_s15, %s47_s15 }
  0x3e   :  { %p1504_p13 = scmp.ne.s32.totalorder %s47_s15, %s1503_s0  ;;  %p1509_p1 = scmp.lt.s32.totalorder %s1503_s0, %s1503_s0 }
  0x40   :  { %p1510_p2 = por %p1509_p1, %p1508_p0 }
  0x42   :  { %p1511_p3 = pnand %p1510_p2, %p1504_p13 }
  0x44   :  { %1514 = shalt.err (!%p1511_p3)
}
  0x45   :  { %49 = dma.hbm_to_vmem [thread:$0]  %s1878_s2, 128, %s47_s15, [#allocation6]  }
  0x46   :  { %s1515_s30 = scalar_lea.hbm %s1880_s4, 512 }
  0x47   :  { %p1516_p4 = scmp.ne.s32.totalorder %s1880_s4, %s1515_s30  ;;  %p1519_p5 = scmp.lt.u32.totalorder %s1515_s30, %s1880_s4 }
  0x49   :  { %p1521_p6 = pnand %p1519_p5, %p1516_p4 }
  0x4b   :  { %1524 = shalt.err (!%p1521_p6)
}
  0x4c   :  { %s1525_s12 = scalar_lea.vmem %s68_s18, 512  ;;  %p1530_p8 = scmp.lt.s32.totalorder %s68_s18, %s68_s18 }
  0x4d   :  { %p1526_p7 = scmp.ne.s32.totalorder %s68_s18, %s1525_s12  ;;  %p1531_p9 = scmp.lt.s32.totalorder %s1525_s12, %s1525_s12 }
  0x4f   :  { %p1532_p10 = por %p1531_p9, %p1530_p8 }
  0x51   :  { %p1533_p11 = pnand %p1532_p10, %p1526_p7 }
  0x53   :  { %1536 = shalt.err (!%p1533_p11)
}
  0x54   :  { %73 = dma.hbm_to_vmem [thread:$0]  %s1880_s4, 512, %s68_s18, [#allocation9], %s1594_s24, %s1594_s24, %s1595_s25  }
  0x55   :  { %1581 = dma.done.wait [#allocation3], 1024  }
  0x56   :  { %1582 = vsyncadd [#allocation3], 4294966272 }
  0x57   :  { %1583 = dma.done.wait [#allocation6], 256  }
  0x58   :  { %1584 = vsyncadd [#allocation6], 4294967040 }
  0x59   :  { %1585 = dma.done.wait [#allocation9], 1024  }
  0x5a   :  { %1586 = vsyncadd [#allocation9], 4294966272  ;;  %v1598_v0 = vmov 0.0|0.0   ;;  %vm1599_vm0 = vmmov 0   ;;  %v1600_v1 = vmov 0.0   ;;  %v91_v2 = vld [vmem:[#allocation8] sm:$0xff] }
  0x5b   :  { %1301 = vmatprep.subr.bf16.mxu1 %v1598_v0  ;;  %1213 = vmatprep.mubr.msk.f32.mxu1 %vm1599_vm0, %v1600_v1  ;;  %v92_v3 = vld [vmem:[#allocation8 + $0x8] sm:$0xff]  ;;  %v95_v4 = vld [vmem:[#allocation10] sm:$0xff]  ;;  %vm114_vm1 = vcmask 261120   ;;  %v93_v7 = vld [vmem:[#allocation8 + $0x10] sm:$0xff]  ;;  %s1601_s14 = smov 64   ;;  %s1602_s15 = smov 32  }
  0x5c   :  { %v1293_v5 = vpack.c.bf16 %v92_v3, %v91_v2  ;;  %v96_v6 = vld [vmem:[#allocation10 + $0x8] sm:$0xff]  ;;  %v94_v8 = vld [vmem:[#allocation8 + $0x18] sm:$0xff]  ;;  %v99_v11 = vld [vmem:[#allocation2] sm:$0xff]  ;;  %s1604_s18 = smov [#allocation12]  }
  0x5d   :  { %v1717_v9 = vpack.c.bf16 %v96_v6, %v95_v4  ;;  %v1297_v10 = vpack.c.bf16 %v94_v8, %v93_v7  ;;  %v97_v12 = vld [vmem:[#allocation10 + $0x10] sm:$0xff]  ;;  %v98_v13 = vld [vmem:[#allocation10 + $0x18] sm:$0xff]  ;;  %1193 = vmatprep.mubr.msk.f32.mxu0 %vm114_vm1, %v99_v11  ;;  %v101_v54 = vld [vmem:[#allocation2 + $0x10] sm:$0xff]  ;;  %s1093_s19 = sshll.u32 %s1604_s18, 4  ;;  %s1094_s19 = int_to_ptr.vmem [resolvable:$true] %s1093_s19 }
  0x5e   :  { %1294 = vmatprep.subr.bf16.mxu0 %v1293_v5  ;;  %v1721_v14 = vpack.c.bf16 %v98_v13, %v97_v12  ;;  %v100_v15 = vld [vmem:[#allocation2 + $0x8] sm:$0xff]  ;;  %v244_v16 = vld [vmem:[#allocation5] sm:$0xff]  ;;  %v102_v55 = vld [vmem:[#allocation2 + $0x18] sm:$0xff] }
  0x5f   :  { %1296 = vmatpush3.bf16.msra.mxu0 %v1293_v5  ;;  %1303 = vmatpush3.bf16.msra.mxu1 %v1717_v9  ;;  %v1742_v17 = vld [vmem:[%s1881_s5] ss:$0 sm:$0xff]  ;;  %v245_v25 = vld [vmem:[#allocation7] sm:$0xff]  ;;  %v105_v58 = vld [vmem:[#allocation2 + $0x30] sm:$0xff]  ;;  %s1603_s5 = smov [#allocation11]  }
  0x60   :  { %1298 = vmatprep.subr.bf16.mxu0 %v1297_v10  ;;  %1304 = vmatprep.subr.bf16.mxu1 %v1598_v0  ;;  %v103_v56 = vld [vmem:[#allocation2 + $0x20] sm:$0xff]  ;;  %v104_v57 = vld [vmem:[#allocation2 + $0x28] sm:$0xff]  ;;  %v106_v59 = vld [vmem:[#allocation2 + $0x38] sm:$0xff]  ;;  %s1080_s17 = sshll.u32 %s1603_s5, 4  ;;  %s1081_s17 = int_to_ptr.vmem [resolvable:$true] %s1080_s17 }
  0x61   :  { %s1537_s20 = scalar_lea.vmem %s1081_s17, 1024  ;;  %p1542_p13 = scmp.lt.s32.totalorder %s1081_s17, %s1081_s17 }
  0x62   :  { %p1538_p12 = scmp.ne.s32.totalorder %s1081_s17, %s1537_s20  ;;  %p1543_p0 = scmp.lt.s32.totalorder %s1537_s20, %s1537_s20 }
  0x63   :  { %1300 = vmatpush3.bf16.msra.mxu0 %v1297_v10  ;;  %1306 = vmatpush3.bf16.msra.mxu1 %v1721_v14 }
  0x64   :  { %1307 = vmatprep.subr.bf16.mxu1 %v1598_v0  ;;  %1313 = vmatprep.subr.bf16.mxu0 %v1598_v0  ;;  %p1544_p1 = por %p1543_p0, %p1542_p13 }
  0x66   :  { %1194 = vmatmul.mubr.msk.f32.vlgmr.msra.gmra.mrb[0].mxu0 %vm114_vm1, %v100_v15  ;;  %1214 = vmatmul.mubr.msk.f32.vlgmr.msra.gmra.mrb[0].mxu1 %vm114_vm1, %v244_v16  ;;  %p1545_p2 = pnand %p1544_p1, %p1538_p12 }
  0x67   :  { %1309 = vmatpush3.bf16.msra.mxu1 %v1717_v9  ;;  %1224 = vmatprep.mubr.msk.f32.mxu1 %vm1599_vm0, %v1600_v1 }
  0x68   :  { %1310 = vmatprep.subr.bf16.mxu1 %v1598_v0  ;;  %1315 = vmatpush3.bf16.msra.mxu0 %v1717_v9 }
  0x69   :  { %1316 = vmatprep.subr.bf16.mxu0 %v1598_v0  ;;  %1196 = vmatprep.mubr.msk.f32.mxu0 %vm114_vm1, %v101_v54 }
  0x6a   :  { %1197 = vmatmul.mubr.msk.f32.gmra.mrb[2].mxu0 %vm114_vm1, %v102_v55 }
  0x6b   :  { %1312 = vmatpush3.bf16.msra.mxu1 %v1721_v14  ;;  %1199 = vmatprep.mubr.msk.f32.mxu0 %vm114_vm1, %v103_v56 }
  0x6c   :  { %1318 = vmatpush3.bf16.msra.mxu0 %v1721_v14  ;;  %1319 = vmatprep.subr.bf16.mxu1 %v1598_v0 }
  0x6d   :  { %1325 = vmatprep.subr.bf16.mxu0 %v1598_v0 }
  0x6e   :  { %1200 = vmatmul.mubr.msk.f32.gmra.mrb[4].mxu0 %vm114_vm1, %v104_v57 }
  0x6f   :  { %1202 = vmatprep.mubr.msk.f32.mxu0 %vm114_vm1, %v105_v58 }
  0x72   :  { %1203 = vmatmul.mubr.msk.f32.gmra.mrb[6].mxu0 %vm114_vm1, %v106_v59 }
  0x73   :  { %1235 = vmatprep.mubr.msk.f32.mxu0 %vm1599_vm0, %v1600_v1 }
 0x139   :  { %v1195_v18 = vpop.f32.mrb[0].mxu0  ;;  %v315_v19 = vpop.f32.mrb[0].mxu1 }
 0x13a   :  { %v205_v20 = vpop.f32.mrb[1].mxu0  ;;  %v1215_v21 = vpop.f32.mrb[1].mxu1  ;;  %v211_v40 = vadd.f32 %v1195_v18, %v1742_v17 }
 0x13b   :  { %v206_v22 = vadd.f32 %v1742_v17, %v205_v20 }
 0x13d   :  { %v319_v23 = vadd.f32 %v315_v19, %v206_v22  ;;  %v1198_v63 = vpop.f32.mrb[2].mxu0 }
 0x13e   :  { %v215_v2 = vpop.f32.mrb[3].mxu0 }
 0x13f   :  { %1363 = vtanh.f32 %v319_v23  ;;  %v1118_v26 = vmul.f32 -1.442695, %v319_v23  ;;  %v216_v8 = vadd.f32 %v1742_v17, %v215_v2 }
 0x141   :  { %1365 = vpow2.f32 %v1118_v26  ;;  %v1771_v3 = vpop.f32.mrb[4].mxu0 }
 0x142   :  { %v1773_v4 = vpop.f32.mrb[5].mxu0 }
 0x145   :  { %v1775_v5 = vpop.f32.mrb[6].mxu0 }
 0x146   :  { %v1777_v6 = vpop.f32.mrb[7].mxu0 }
 0x149   :  { %v1364_v24 = vpop.eup %1363 }
 0x14a   :  { %333 = vrot.lane.b32.xlu0 %v1364_v24, %s1601_s14 }
 0x14b   :  { %v1366_v27 = vpop.eup %1365 }
 0x14c   :  { %v323_v28 = vadd.f32 1.0, %v1366_v27 }
 0x14e   :  { %328 = vrot.lane.b32.xlu0 %v245_v25, %s1602_s15  ;;  %1367 = vrcp.f32 %v323_v28 }
 0x158   :  { %v1368_v29 = vpop.eup %1367 }
 0x1bc   :  { %v334_v30 = vpop.permute.xlu0 %333 }
 0x1bd   :  { %v336_v31 = vmul.f32 %v1368_v29, %v334_v30 }
 0x1bf   :  { %338 = vrot.lane.b32.xlu1 %v336_v31, %s1602_s15 }
 0x1c0   :  { %v329_v32 = vpop.permute.xlu0 %328 }
 0x1c1   :  { %v331_v33 = vmul.f32 %v1368_v29, %v329_v32 }
 0x231   :  { %v339_v34 = vpop.permute.xlu1 %338 }
 0x232   :  { %v341_v35 = vadd.f32 %v339_v34, %v331_v33 }
 0x234   :  { %1369 = vtanh.f32 %v341_v35 }
 0x23e   :  { %v1370_v36 = vpop.eup %1369 }
 0x23f   :  { %344 = vrot.lane.b32.xlu1 %v1370_v36, %s1601_s14 }
 0x2b1   :  { %v345_v37 = vpop.permute.xlu1 %344 }
 0x2b2   :  { %v347_v38 = vmul.f32 %v1368_v29, %v345_v37  ;;  %v221_v29 = vadd.f32 %v1198_v63, %v1742_v17 }
 0x2b4   :  { %349 = vrot.lane.b32.xlu0 %v347_v38, %s1602_s15 }
 0x326   :  { %v350_v39 = vpop.permute.xlu0 %349 }
 0x327   :  { %352 = vst.msk [vmem:[#allocation11] sm:$0xff] %vm114_vm1, %v350_v39  ;;  %1225 = vmatmul.mubr.msk.f32.vlgmr.msra.gmra.mrb[2].mxu1 %vm114_vm1, %v350_v39 }
 0x328   :  { %1321 = vmatpush3.bf16.msra.mxu1 %v1717_v9  ;;  %1246 = vmatprep.mubr.msk.f32.mxu1 %vm1599_vm0, %v1600_v1 }
 0x329   :  { %1322 = vmatprep.subr.bf16.mxu1 %v1598_v0 }
 0x32c   :  { %1324 = vmatpush3.bf16.msra.mxu1 %v1721_v14 }
 0x32d   :  { %1331 = vmatprep.subr.bf16.mxu1 %v1598_v0 }
 0x3fa   :  { %v421_v41 = vpop.f32.mrb[2].mxu1 }
 0x3fb   :  { %v425_v42 = vadd.f32 %v421_v41, %v211_v40  ;;  %v1226_v43 = vpop.f32.mrb[3].mxu1 }
 0x3fd   :  { %1371 = vtanh.f32 %v425_v42  ;;  %v1120_v45 = vmul.f32 -1.442695, %v425_v42 }
 0x3ff   :  { %1373 = vpow2.f32 %v1120_v45 }
 0x407   :  { %v1372_v44 = vpop.eup %1371 }
 0x408   :  { %435 = vrot.lane.b32.xlu1 %v1372_v44, %s1601_s14 }
 0x409   :  { %v1374_v46 = vpop.eup %1373 }
 0x40a   :  { %v429_v47 = vadd.f32 1.0, %v1374_v46 }
 0x40c   :  { %1375 = vrcp.f32 %v429_v47  ;;  %v226_v47 = vadd.f32 %v1742_v17, %v1773_v4  ;;  %v231_v4 = vadd.f32 %v1771_v3, %v1742_v17 }
 0x416   :  { %v1376_v48 = vpop.eup %1375 }
 0x417   :  { %v433_v51 = vmul.f32 %v1376_v48, %v341_v35 }
 0x47a   :  { %v436_v49 = vpop.permute.xlu1 %435 }
 0x47b   :  { %v438_v50 = vmul.f32 %v1376_v48, %v436_v49 }
 0x47d   :  { %440 = vrot.lane.b32.xlu0 %v438_v50, %s1602_s15 }
 0x4ef   :  { %v441_v52 = vpop.permute.xlu0 %440 }
 0x4f0   :  { %v443_v53 = vadd.f32 %v441_v52, %v433_v51 }
 0x4f2   :  { %1377 = vtanh.f32 %v443_v53 }
 0x4fc   :  { %v1378_v60 = vpop.eup %1377 }
 0x4fd   :  { %446 = vrot.lane.b32.xlu1 %v1378_v60, %s1601_s14 }
 0x56f   :  { %v447_v61 = vpop.permute.xlu1 %446 }
 0x570   :  { %v449_v62 = vmul.f32 %v1376_v48, %v447_v61 }
 0x572   :  { %451 = vrot.lane.b32.xlu0 %v449_v62, %s1602_s15 }
 0x5e4   :  { %v452_v7 = vpop.permute.xlu0 %451 }
 0x5e5   :  { %455 = vst.msk [vmem:[#allocation11 + $0x8] sm:$0xff] %vm114_vm1, %v452_v7  ;;  %1236 = vmatmul.mubr.msk.f32.vlgmr.msra.gmra.mrb[8].mxu0 %vm114_vm1, %v452_v7 }
 0x5e6   :  { %1327 = vmatpush3.bf16.msra.mxu0 %v1717_v9  ;;  %1257 = vmatprep.mubr.msk.f32.mxu0 %vm1599_vm0, %v1600_v1 }
 0x5e7   :  { %1328 = vmatprep.subr.bf16.mxu0 %v1598_v0 }
 0x5ea   :  { %1330 = vmatpush3.bf16.msra.mxu0 %v1721_v14 }
 0x5eb   :  { %1337 = vmatprep.subr.bf16.mxu0 %v1598_v0 }
 0x6b8   :  { %v524_v10 = vpop.f32.mrb[8].mxu0 }
 0x6b9   :  { %v528_v11 = vadd.f32 %v524_v10, %v216_v8  ;;  %v1237_v12 = vpop.f32.mrb[9].mxu0 }
 0x6bb   :  { %1379 = vtanh.f32 %v528_v11  ;;  %v1122_v15 = vmul.f32 -1.442695, %v528_v11 }
 0x6bd   :  { %1381 = vpow2.f32 %v1122_v15 }
 0x6c5   :  { %v1380_v13 = vpop.eup %1379 }
 0x6c6   :  { %538 = vrot.lane.b32.xlu1 %v1380_v13, %s1601_s14 }
 0x6c7   :  { %v1382_v16 = vpop.eup %1381 }
 0x6c8   :  { %v532_v18 = vadd.f32 1.0, %v1382_v16 }
 0x6ca   :  { %1383 = vrcp.f32 %v532_v18 }
 0x6d4   :  { %v1384_v19 = vpop.eup %1383 }
 0x6d5   :  { %v536_v22 = vmul.f32 %v1384_v19, %v443_v53 }
 0x738   :  { %v539_v20 = vpop.permute.xlu1 %538 }
 0x739   :  { %v541_v21 = vmul.f32 %v1384_v19, %v539_v20 }
 0x73b   :  { %543 = vrot.lane.b32.xlu0 %v541_v21, %s1602_s15 }
 0x7ad   :  { %v544_v23 = vpop.permute.xlu0 %543 }
 0x7ae   :  { %v546_v24 = vadd.f32 %v544_v23, %v536_v22  ;;  %v236_v22 = vadd.f32 %v1742_v17, %v1777_v6 }
 0x7b0   :  { %1385 = vtanh.f32 %v546_v24 }
 0x7ba   :  { %v1386_v25 = vpop.eup %1385 }
 0x7bb   :  { %549 = vrot.lane.b32.xlu1 %v1386_v25, %s1601_s14 }
 0x82d   :  { %v550_v26 = vpop.permute.xlu1 %549 }
 0x82e   :  { %v552_v27 = vmul.f32 %v1384_v19, %v550_v26 }
 0x830   :  { %554 = vrot.lane.b32.xlu0 %v552_v27, %s1602_s15 }
 0x8a2   :  { %v555_v28 = vpop.permute.xlu0 %554 }
 0x8a3   :  { %558 = vst.msk [vmem:[#allocation11 + $0x10] sm:$0xff] %vm114_vm1, %v555_v28  ;;  %1247 = vmatmul.mubr.msk.f32.vlgmr.msra.gmra.mrb[4].mxu1 %vm114_vm1, %v555_v28 }
 0x8a4   :  { %1333 = vmatpush3.bf16.msra.mxu1 %v1717_v9  ;;  %1268 = vmatprep.mubr.msk.f32.mxu1 %vm1599_vm0, %v1600_v1 }
 0x8a5   :  { %1334 = vmatprep.subr.bf16.mxu1 %v1598_v0 }
 0x8a8   :  { %1336 = vmatpush3.bf16.msra.mxu1 %v1721_v14 }
 0x8a9   :  { %1343 = vmatprep.subr.bf16.mxu1 %v1598_v0 }
 0x976   :  { %v627_v30 = vpop.f32.mrb[4].mxu1 }
 0x977   :  { %v631_v31 = vadd.f32 %v627_v30, %v221_v29  ;;  %v1248_v32 = vpop.f32.mrb[5].mxu1 }
 0x979   :  { %1387 = vtanh.f32 %v631_v31  ;;  %v1124_v34 = vmul.f32 -1.442695, %v631_v31 }
 0x97b   :  { %1389 = vpow2.f32 %v1124_v34 }
 0x983   :  { %v1388_v33 = vpop.eup %1387 }
 0x984   :  { %641 = vrot.lane.b32.xlu1 %v1388_v33, %s1601_s14 }
 0x985   :  { %v1390_v35 = vpop.eup %1389 }
 0x986   :  { %v635_v36 = vadd.f32 1.0, %v1390_v35 }
 0x988   :  { %1391 = vrcp.f32 %v635_v36 }
 0x992   :  { %v1392_v37 = vpop.eup %1391 }
 0x993   :  { %v639_v40 = vmul.f32 %v1392_v37, %v546_v24 }
 0x9f6   :  { %v642_v38 = vpop.permute.xlu1 %641 }
 0x9f7   :  { %v644_v39 = vmul.f32 %v1392_v37, %v642_v38 }
 0x9f9   :  { %646 = vrot.lane.b32.xlu0 %v644_v39, %s1602_s15  ;;  %v241_v39 = vadd.f32 %v1775_v5, %v1742_v17 }
 0xa6b   :  { %v647_v41 = vpop.permute.xlu0 %646 }
 0xa6c   :  { %v649_v42 = vadd.f32 %v647_v41, %v639_v40 }
 0xa6e   :  { %1393 = vtanh.f32 %v649_v42 }
 0xa78   :  { %v1394_v43 = vpop.eup %1393 }
 0xa79   :  { %652 = vrot.lane.b32.xlu1 %v1394_v43, %s1601_s14 }
 0xaeb   :  { %v653_v44 = vpop.permute.xlu1 %652 }
 0xaec   :  { %v655_v45 = vmul.f32 %v1392_v37, %v653_v44 }
 0xaee   :  { %657 = vrot.lane.b32.xlu0 %v655_v45, %s1602_s15 }
 0xb60   :  { %v658_v46 = vpop.permute.xlu0 %657 }
 0xb61   :  { %661 = vst.msk [vmem:[#allocation11 + $0x18] sm:$0xff] %vm114_vm1, %v658_v46  ;;  %1258 = vmatmul.mubr.msk.f32.vlgmr.msra.gmra.mrb[10].mxu0 %vm114_vm1, %v658_v46 }
 0xb62   :  { %1339 = vmatpush3.bf16.msra.mxu0 %v1717_v9  ;;  %1279 = vmatprep.mubr.msk.f32.mxu0 %vm1599_vm0, %v1600_v1 }
 0xb63   :  { %1340 = vmatprep.subr.bf16.mxu0 %v1598_v0 }
 0xb66   :  { %1342 = vmatpush3.bf16.msra.mxu0 %v1721_v14 }
 0xc34   :  { %v730_v48 = vpop.f32.mrb[10].mxu0 }
 0xc35   :  { %v734_v49 = vadd.f32 %v730_v48, %v226_v47  ;;  %v1259_v50 = vpop.f32.mrb[11].mxu0 }
 0xc37   :  { %1395 = vtanh.f32 %v734_v49  ;;  %v1126_v52 = vmul.f32 -1.442695, %v734_v49 }
 0xc39   :  { %1397 = vpow2.f32 %v1126_v52 }
 0xc41   :  { %v1396_v51 = vpop.eup %1395 }
 0xc42   :  { %744 = vrot.lane.b32.xlu1 %v1396_v51, %s1601_s14 }
 0xc43   :  { %v1398_v53 = vpop.eup %1397 }
 0xc44   :  { %v738_v54 = vadd.f32 1.0, %v1398_v53 }
 0xc46   :  { %1399 = vrcp.f32 %v738_v54 }
 0xc50   :  { %v1400_v55 = vpop.eup %1399 }
 0xc51   :  { %v742_v58 = vmul.f32 %v1400_v55, %v649_v42 }
 0xcb4   :  { %v745_v56 = vpop.permute.xlu1 %744 }
 0xcb5   :  { %v747_v57 = vmul.f32 %v1400_v55, %v745_v56 }
 0xcb7   :  { %749 = vrot.lane.b32.xlu0 %v747_v57, %s1602_s15 }
 0xd29   :  { %v750_v59 = vpop.permute.xlu0 %749 }
 0xd2a   :  { %v752_v60 = vadd.f32 %v750_v59, %v742_v58 }
 0xd2c   :  { %1401 = vtanh.f32 %v752_v60 }
 0xd36   :  { %v1402_v61 = vpop.eup %1401 }
 0xd37   :  { %755 = vrot.lane.b32.xlu1 %v1402_v61, %s1601_s14 }
 0xda9   :  { %v756_v62 = vpop.permute.xlu1 %755 }
 0xdaa   :  { %v758_v63 = vmul.f32 %v1400_v55, %v756_v62 }
 0xdac   :  { %760 = vrot.lane.b32.xlu0 %v758_v63, %s1602_s15 }
 0xe1e   :  { %v761_v2 = vpop.permute.xlu0 %760 }
 0xe1f   :  { %764 = vst.msk [vmem:[#allocation11 + $0x20] sm:$0xff] %vm114_vm1, %v761_v2  ;;  %1269 = vmatmul.mubr.msk.f32.vlgmr.msra.gmra.mrb[6].mxu1 %vm114_vm1, %v761_v2 }
 0xe20   :  { %1345 = vmatpush3.bf16.msra.mxu1 %v1717_v9  ;;  %1290 = vmatprep.mubr.msk.f32.mxu1 %vm1599_vm0, %v1600_v1 }
 0xe21   :  { %1346 = vmatprep.subr.bf16.mxu1 %v1598_v0 }
 0xe24   :  { %1348 = vmatpush3.bf16.msra.mxu1 %v1721_v14 }
 0xef2   :  { %v833_v7 = vpop.f32.mrb[6].mxu1 }
 0xef3   :  { %v837_v8 = vadd.f32 %v833_v7, %v231_v4  ;;  %v1270_v10 = vpop.f32.mrb[7].mxu1 }
 0xef5   :  { %1403 = vtanh.f32 %v837_v8  ;;  %v1128_v12 = vmul.f32 -1.442695, %v837_v8 }
 0xef7   :  { %1405 = vpow2.f32 %v1128_v12 }
 0xeff   :  { %v1404_v11 = vpop.eup %1403 }
 0xf00   :  { %847 = vrot.lane.b32.xlu1 %v1404_v11, %s1601_s14 }
 0xf01   :  { %v1406_v9 = vpop.eup %1405 }
 0xf02   :  { %v841_v13 = vadd.f32 1.0, %v1406_v9 }
 0xf04   :  { %1407 = vrcp.f32 %v841_v13 }
 0xf0e   :  { %v1408_v1 = vpop.eup %1407 }
 0xf0f   :  { %v845_v14 = vmul.f32 %v1408_v1, %v752_v60 }
 0xf72   :  { %v848_v15 = vpop.permute.xlu1 %847 }
 0xf73   :  { %v850_v0 = vmul.f32 %v1408_v1, %v848_v15 }
 0xf75   :  { %852 = vrot.lane.b32.xlu0 %v850_v0, %s1602_s15 }
 0xfe7   :  { %v853_v16 = vpop.permute.xlu0 %852 }
 0xfe8   :  { %v855_v3 = vadd.f32 %v853_v16, %v845_v14 }
 0xfea   :  { %1409 = vtanh.f32 %v855_v3 }
 0xff4   :  { %v1410_v18 = vpop.eup %1409 }
 0xff5   :  { %858 = vrot.lane.b32.xlu1 %v1410_v18, %s1601_s14 }
0x1067   :  { %v859_v19 = vpop.permute.xlu1 %858 }
0x1068   :  { %v861_v20 = vmul.f32 %v1408_v1, %v859_v19 }
0x106a   :  { %863 = vrot.lane.b32.xlu0 %v861_v20, %s1602_s15 }
0x10dc   :  { %v864_v21 = vpop.permute.xlu0 %863 }
0x10dd   :  { %867 = vst.msk [vmem:[#allocation11 + $0x28] sm:$0xff] %vm114_vm1, %v864_v21  ;;  %1280 = vmatmul.mubr.msk.f32.vlgmr.msra.gmra.mrb[12].mxu0 %vm114_vm1, %v864_v21 }
0x11b0   :  { %v936_v23 = vpop.f32.mrb[12].mxu0 }
0x11b1   :  { %v940_v24 = vadd.f32 %v936_v23, %v236_v22  ;;  %v1281_v25 = vpop.f32.mrb[13].mxu0 }
0x11b3   :  { %1411 = vtanh.f32 %v940_v24  ;;  %v1130_v27 = vmul.f32 -1.442695, %v940_v24 }
0x11b5   :  { %1413 = vpow2.f32 %v1130_v27 }
0x11bd   :  { %v1412_v26 = vpop.eup %1411 }
0x11be   :  { %950 = vrot.lane.b32.xlu1 %v1412_v26, %s1601_s14 }
0x11bf   :  { %v1414_v28 = vpop.eup %1413 }
0x11c0   :  { %v944_v29 = vadd.f32 1.0, %v1414_v28 }
0x11c2   :  { %1415 = vrcp.f32 %v944_v29 }
0x11cc   :  { %v1416_v30 = vpop.eup %1415 }
0x11cd   :  { %v948_v33 = vmul.f32 %v1416_v30, %v855_v3 }
0x1230   :  { %v951_v31 = vpop.permute.xlu1 %950 }
0x1231   :  { %v953_v32 = vmul.f32 %v1416_v30, %v951_v31 }
0x1233   :  { %955 = vrot.lane.b32.xlu0 %v953_v32, %s1602_s15 }
0x12a5   :  { %v956_v34 = vpop.permute.xlu0 %955 }
0x12a6   :  { %v958_v6 = vadd.f32 %v956_v34, %v948_v33 }
0x12a8   :  { %1417 = vtanh.f32 %v958_v6 }
0x12b2   :  { %v1418_v35 = vpop.eup %1417 }
0x12b3   :  { %961 = vrot.lane.b32.xlu1 %v1418_v35, %s1601_s14 }
0x1325   :  { %v962_v36 = vpop.permute.xlu1 %961 }
0x1326   :  { %v964_v37 = vmul.f32 %v1416_v30, %v962_v36 }
0x1328   :  { %966 = vrot.lane.b32.xlu0 %v964_v37, %s1602_s15 }
0x139a   :  { %v967_v38 = vpop.permute.xlu0 %966 }
0x139b   :  { %970 = vst.msk [vmem:[#allocation11 + $0x30] sm:$0xff] %vm114_vm1, %v967_v38  ;;  %1291 = vmatmul.mubr.msk.f32.vlgmr.msra.gmra.mrb[8].mxu1 %vm114_vm1, %v967_v38 }
0x146e   :  { %v1039_v40 = vpop.f32.mrb[8].mxu1 }
0x146f   :  { %v1043_v41 = vadd.f32 %v1039_v40, %v241_v39  ;;  %v1292_v42 = vpop.f32.mrb[9].mxu1 }
0x1471   :  { %1419 = vtanh.f32 %v1043_v41  ;;  %v1132_v44 = vmul.f32 -1.442695, %v1043_v41 }
0x1473   :  { %1421 = vpow2.f32 %v1132_v44 }
0x147b   :  { %v1420_v43 = vpop.eup %1419 }
0x147c   :  { %1053 = vrot.lane.b32.xlu1 %v1420_v43, %s1601_s14 }
0x147d   :  { %v1422_v45 = vpop.eup %1421 }
0x147e   :  { %v1047_v46 = vadd.f32 1.0, %v1422_v45 }
0x1480   :  { %1423 = vrcp.f32 %v1047_v46 }
0x148a   :  { %v1424_v47 = vpop.eup %1423 }
0x148b   :  { %v1051_v50 = vmul.f32 %v1424_v47, %v958_v6 }
0x14ee   :  { %v1054_v48 = vpop.permute.xlu1 %1053 }
0x14ef   :  { %v1056_v49 = vmul.f32 %v1424_v47, %v1054_v48 }
0x14f1   :  { %1058 = vrot.lane.b32.xlu0 %v1056_v49, %s1602_s15 }
0x1563   :  { %v1059_v51 = vpop.permute.xlu0 %1058 }
0x1564   :  { %v1061_v17 = vadd.f32 %v1059_v51, %v1051_v50 }
0x1566   :  { %1425 = vtanh.f32 %v1061_v17 }
0x1570   :  { %v1426_v5 = vpop.eup %1425 }
0x1571   :  { %1064 = vrot.lane.b32.xlu1 %v1426_v5, %s1601_s14 }
0x15e3   :  { %v1065_v52 = vpop.permute.xlu1 %1064 }
0x15e4   :  { %v1067_v53 = vmul.f32 %v1424_v47, %v1065_v52 }
0x15e6   :  { %1069 = vrot.lane.b32.xlu0 %v1067_v53, %s1602_s15 }
0x1658   :  { %v1070_v54 = vpop.permute.xlu0 %1069 }
0x1659   :  { %1073 = vst.msk [vmem:[#allocation11 + $0x38] sm:$0xff] %vm114_vm1, %v1070_v54  ;;  %1074 = vst.msk [vmem:[#allocation12] sm:$0xff] %vm114_vm1, %v1070_v54 }
0x165a   :  { %1548 = shalt.err (!%p1545_p2)
}
0x165b   :  { %s1549_s23 = scalar_lea.hbm %s1882_s6, 1024 }
0x165c   :  { %p1550_p3 = scmp.ne.s32.totalorder %s1882_s6, %s1549_s23  ;;  %p1553_p4 = scmp.lt.u32.totalorder %s1549_s23, %s1882_s6 }
0x165e   :  { %p1555_p5 = pnand %p1553_p4, %p1550_p3 }
0x1660   :  { %1558 = shalt.err (!%p1555_p5)
}
0x1661   :  { %1086 = dma.vmem_to_hbm [thread:$0]  %s1081_s17, 1024, %s1882_s6, [#allocation4], %s1594_s24, %s1594_s24, %s1595_s25  }
0x1662   :  { %s1559_s29 = scalar_lea.vmem %s1094_s19, 128  ;;  %p1564_p7 = scmp.lt.s32.totalorder %s1094_s19, %s1094_s19 }
0x1663   :  { %p1560_p6 = scmp.ne.s32.totalorder %s1094_s19, %s1559_s29  ;;  %p1565_p8 = scmp.lt.s32.totalorder %s1559_s29, %s1559_s29 }
0x1665   :  { %p1566_p9 = por %p1565_p8, %p1564_p7 }
0x1667   :  { %p1567_p10 = pnand %p1566_p9, %p1560_p6 }
0x1669   :  { %1570 = shalt.err (!%p1567_p10)
}
0x166a   :  { %s1571_s9 = scalar_lea.hbm %s1883_s7, 128 }
0x166b   :  { %p1572_p11 = scmp.ne.s32.totalorder %s1883_s7, %s1571_s9  ;;  %p1575_p12 = scmp.lt.u32.totalorder %s1571_s9, %s1883_s7 }
0x166d   :  { %p1577_p13 = pnand %p1575_p12, %p1572_p11 }
0x166f   :  { %1580 = shalt.err (!%p1577_p13)
}
0x1670   :  { %1096 = dma.vmem_to_hbm [thread:$0]  %s1094_s19, 128, %s1883_s7, [#allocation13]  }
0x1671   :  { %1587 = dma.done.wait [#allocation4], 1024  }
0x1672   :  { %1588 = vsyncadd [#allocation4], 4294966272 }
0x1673   :  { %1589 = dma.done.wait [#allocation13], 128  }
0x1674   :  { %1590 = vsyncadd [#allocation13], 4294967168 }
0x1675   :  { %1103 = vsyncpa [#allocation3], 1 }
0x1676   :  { %1104 = vsyncpa [#allocation6], 1 }
0x1677   :  { %1105 = vsyncpa [#allocation9], 1 }
0x1678   :  { %1106 = vsyncpa [#allocation4], 1 }
0x1679   :  { %1107 = vsyncpa [#allocation13], 1 }

</bundles_post_ra>
